<compile_context>
chip_gen: v5e
topology: v5e:2x2
jax: 0.10.0
libtpu: 0.0.40
codegen_flags: <defaults>
</compile_context>

<pallas_src>
import jax
import jax.numpy as jnp
from jax.experimental import pallas as pl
from jax.experimental.pallas import tpu as pltpu


def _round_up(x, m):
    return ((x + m - 1) // m) * m


def _choose_row_tile(n_pad, h_pad, a_bytes, budget_bytes=24 << 20):
    """Largest multiple-of-128 row tile (<= 512) whose double-buffered A_hat
    block fits the VMEM budget left after the resident XW1 scratch."""
    avail = budget_bytes - n_pad * h_pad * a_bytes
    tm = 512
    while tm > 128 and 2 * tm * n_pad * a_bytes > max(avail, 0):
        tm -= 128
    return min(tm, n_pad)


def _gcn_kernel(a_ref, am_ref, x_ref, w1_ref, b1_ref, w2_ref, b2_ref,
                out_ref, xw1_ref, acc_ref):
    step = pl.program_id(0)

    # Grid-invariant work: XW1 = X @ W1 computed once, kept resident in VMEM.
    @pl.when(step == 0)
    def _():
        xw1 = jnp.dot(x_ref[...], w1_ref[...],
                      preferred_element_type=jnp.float32)
        xw1_ref[...] = xw1.astype(xw1_ref.dtype)
        acc_ref[...] = jnp.zeros_like(acc_ref)

    # Layer 1 for this destination-row tile:  relu(A_tile @ XW1 + b1)
    h1 = jnp.dot(a_ref[...], xw1_ref[...],
                 preferred_element_type=jnp.float32) + b1_ref[...]
    h1 = jnp.maximum(h1, 0.0)

    # Readout-fused layer 2 partial:  acc += a_mean_tile @ H1_tile   ([1, H])
    acc_ref[...] += jnp.dot(am_ref[...], h1,
                            preferred_element_type=jnp.float32)

    # Finalize:  out = acc @ W2 + b2   ([1, C])
    @pl.when(step == pl.num_programs(0) - 1)
    def _():
        out_ref[...] = (jnp.dot(acc_ref[...], w2_ref[...],
                                preferred_element_type=jnp.float32)
                        + b2_ref[...])


def gcn_forward(a_hat, x, w1, b1, w2, b2, *, use_bf16=True):
    n = a_hat.shape[0]
    in_feats = x.shape[1]
    h_feats = w1.shape[1]
    num_classes = w2.shape[1]

    a_dtype = jnp.bfloat16 if use_bf16 else jnp.float32
    a_bytes = 2 if use_bf16 else 4

    # Lane-dense padded dims.
    f_pad = _round_up(in_feats, 128)
    h_pad = _round_up(h_feats, 128)
    c_pad = _round_up(num_classes, 128)

    n128 = _round_up(n, 128)
    tm = _choose_row_tile(n128, h_pad, a_bytes)
    n_pad = _round_up(n, tm)
    num_tiles = n_pad // tm

    # Readout fused into layer 2: a_mean = mean over destination rows of A_hat
    # (computed on the unpadded adjacency so padded rows contribute zero).
    a_mean = (jnp.sum(a_hat, axis=0, keepdims=True) / n).astype(jnp.float32)

    # Zero-padded operands.
    a_p = jnp.zeros((n_pad, n_pad), a_dtype).at[:n, :n].set(a_hat.astype(a_dtype))
    am_p = jnp.zeros((1, n_pad), jnp.float32).at[:, :n].set(a_mean)
    x_p = jnp.zeros((n_pad, f_pad), jnp.float32).at[:n, :in_feats].set(x)
    w1_p = jnp.zeros((f_pad, h_pad), jnp.float32).at[:in_feats, :h_feats].set(w1)
    b1_p = jnp.zeros((1, h_pad), jnp.float32).at[:, :h_feats].set(b1)
    w2_p = jnp.zeros((h_pad, c_pad), jnp.float32).at[:h_feats, :num_classes].set(w2)
    b2_p = jnp.zeros((1, c_pad), jnp.float32).at[:, :num_classes].set(b2)

    # Explicit VMEM budget (headroom over the actual footprint, capped so it
    # is valid on v7x's 64 MiB physical VMEM as well as v5e/v6e).
    est = (2 * tm * n_pad * a_bytes            # double-buffered A tiles
           + n_pad * h_pad * a_bytes           # XW1 scratch
           + n_pad * f_pad * 4                 # X (resident)
           + f_pad * h_pad * 4                 # W1
           + h_pad * c_pad * 4                 # W2
           + 2 * 2 * tm * 4                    # a_mean tiles
           + 8 * (h_pad + c_pad) * 4)          # biases / acc / out
    vmem_limit = int(min(max(2 * est, 16 << 20), 64 << 20))

    grid_spec = pltpu.PrefetchScalarGridSpec(
        num_scalar_prefetch=0,
        grid=(num_tiles,),
        in_specs=[
            pl.BlockSpec((tm, n_pad), lambda i: (i, 0)),     # A_hat row tile
            pl.BlockSpec((1, tm), lambda i: (0, i)),         # a_mean slice
            pl.BlockSpec((n_pad, f_pad), lambda i: (0, 0)),  # X (resident)
            pl.BlockSpec((f_pad, h_pad), lambda i: (0, 0)),  # W1
            pl.BlockSpec((1, h_pad), lambda i: (0, 0)),      # b1
            pl.BlockSpec((h_pad, c_pad), lambda i: (0, 0)),  # W2
            pl.BlockSpec((1, c_pad), lambda i: (0, 0)),      # b2
        ],
        out_specs=pl.BlockSpec((1, c_pad), lambda i: (0, 0)),
        scratch_shapes=[
            pltpu.VMEM((n_pad, h_pad), a_dtype),             # XW1 (resident)
            pltpu.VMEM((1, h_pad), jnp.float32),             # acc = a_mean @ H1
        ],
    )

    out_p = pl.pallas_call(
        _gcn_kernel,
        out_shape=jax.ShapeDtypeStruct((1, c_pad), jnp.float32),
        grid_spec=grid_spec,
        compiler_params=pltpu.CompilerParams(
            dimension_semantics=("arbitrary",),   # reduction over row tiles
            vmem_limit_bytes=vmem_limit,
        ),
    )(a_p, am_p, x_p, w1_p, b1_p, w2_p, b2_p)

    return out_p[:, :num_classes]


def _glorot(key, shape):
    fan_in, fan_out = shape
    limit = jnp.sqrt(6.0 / (fan_in + fan_out))
    return jax.random.uniform(key, shape, jnp.float32, -limit, limit)


def build_normalized_adjacency(src, dst, num_nodes):
    """Dense A_hat = D_in^{-1/2} A D_out^{-1/2} with A[dst, src] = 1."""
    a = jnp.zeros((num_nodes, num_nodes), jnp.float32)
    a = a.at[dst, src].set(1.0)
    deg_out = jnp.clip(a.sum(axis=0), 1.0)   # out-degree of each source node
    deg_in = jnp.clip(a.sum(axis=1), 1.0)    # in-degree of each destination node
    return a * (deg_in[:, None] ** -0.5) * (deg_out[None, :] ** -0.5)


if __name__ == "__main__":
    # Small shapes: 16 nodes, in_feats=8, h_feats=32, num_classes=4.
    N, IN_FEATS, H_FEATS, NUM_CLASSES = 16, 8, 32, 4

    key = jax.random.PRNGKey(0)
    k_feat, k_w1, k_w2 = jax.random.split(key, 3)

    # Deterministic node features.
    x = jax.random.normal(k_feat, (N, IN_FEATS), jnp.float32)

    # Bidirectional ring graph (every node has in/out degree 2, so there are
    # no zero-in-degree nodes, matching DGL's requirement).
    nodes = jnp.arange(N)
    src = jnp.concatenate([nodes, (nodes + 1) % N])
    dst = jnp.concatenate([(nodes + 1) % N, nodes])
    a_hat = build_normalized_adjacency(src, dst, N)

    # Deterministic parameter init (Glorot uniform weights, zero bias).
    w1 = _glorot(k_w1, (IN_FEATS, H_FEATS))
    b1 = jnp.zeros((1, H_FEATS), jnp.float32)
    w2 = _glorot(k_w2, (H_FEATS, NUM_CLASSES))
    b2 = jnp.zeros((1, NUM_CLASSES), jnp.float32)

    out = gcn_forward(a_hat, x, w1, b1, w2, b2)
    out = jax.block_until_ready(out)

    # Pure-f32 JAX reference of the original module math.
    h1_ref = jnp.maximum(a_hat @ (x @ w1) + b1, 0.0)
    h2_ref = a_hat @ (h1_ref @ w2) + b2
    ref = jnp.mean(h2_ref, axis=0, keepdims=True)

    assert out.shape == (1, NUM_CLASSES)
    # bf16 streaming of A_hat / XW1 (f32 accumulation) -> loosened tolerance.
    assert jnp.allclose(out, ref, atol=1e-2, rtol=1e-2), (out, ref)

    print("KERNEL_OK")
</pallas_src>

<mosaic_0001>
module attributes {stable_mosaic.version = 11 : i64} {
  func.func @_gcn_kernel(%arg0: i32, %arg1: memref<128x128xbf16, #tpu.memory_space<vmem>>, %arg2: memref<1x128xf32, #tpu.memory_space<vmem>>, %arg3: memref<128x128xf32, #tpu.memory_space<vmem>>, %arg4: memref<128x128xf32, #tpu.memory_space<vmem>>, %arg5: memref<1x128xf32, #tpu.memory_space<vmem>>, %arg6: memref<128x128xf32, #tpu.memory_space<vmem>>, %arg7: memref<1x128xf32, #tpu.memory_space<vmem>>, %arg8: memref<1x128xf32, #tpu.memory_space<vmem>>, %arg9: memref<128x128xbf16, #tpu.memory_space<vmem>>, %arg10: memref<1x128xf32, #tpu.memory_space<vmem>>) attributes {dimension_semantics = [#tpu.dimension_semantics<arbitrary>], iteration_bounds = array<i64: 1>, scalar_prefetch = 0 : i64, scratch_operands = 2 : i64, tpu.core_type = #tpu.core_type<tc>, window_params = [{transform_indices = @transform_0, window_bounds = array<i64: 128, 128>}, {transform_indices = @transform_1, window_bounds = array<i64: 1, 128>}, {pipeline_mode = #tpu.pipeline_mode<synchronous>, transform_indices = @transform_2, window_bounds = array<i64: 128, 128>}, {pipeline_mode = #tpu.pipeline_mode<synchronous>, transform_indices = @transform_3, window_bounds = array<i64: 128, 128>}, {pipeline_mode = #tpu.pipeline_mode<synchronous>, transform_indices = @transform_4, window_bounds = array<i64: 1, 128>}, {pipeline_mode = #tpu.pipeline_mode<synchronous>, transform_indices = @transform_5, window_bounds = array<i64: 128, 128>}, {pipeline_mode = #tpu.pipeline_mode<synchronous>, transform_indices = @transform_6, window_bounds = array<i64: 1, 128>}, {pipeline_mode = #tpu.pipeline_mode<synchronous>, transform_indices = @transform_7, window_bounds = array<i64: 1, 128>}]} {
    %c0_i32 = arith.constant 0 : i32
    %0 = arith.cmpi eq, %arg0, %c0_i32 : i32
    %1 = arith.extui %0 : i1 to i32
    %c0_i32_0 = arith.constant 0 : i32
    %2 = arith.cmpi ne, %1, %c0_i32_0 : i32
    scf.if %2 {
      %c0_16 = arith.constant 0 : index
      %c0_17 = arith.constant 0 : index
      %19 = vector.load %arg3[%c0_16, %c0_17] : memref<128x128xf32, #tpu.memory_space<vmem>>, vector<128x128xf32>
      %c0_18 = arith.constant 0 : index
      %c0_19 = arith.constant 0 : index
      %20 = vector.load %arg4[%c0_18, %c0_19] : memref<128x128xf32, #tpu.memory_space<vmem>>, vector<128x128xf32>
      %cst_20 = arith.constant dense<0.000000e+00> : vector<128x128xf32>
      %21 = tpu.matmul %19, %20, %cst_20 {dimension_numbers = #tpu.dot_dimension_numbers<[1], [0], [0], [1], [0, 0, 1, 1], [], []>} : vector<128x128xf32>, vector<128x128xf32>, vector<128x128xf32> -> vector<128x128xf32>
      %22 = arith.truncf %21 : vector<128x128xf32> to vector<128x128xbf16>
      %c0_21 = arith.constant 0 : index
      %c0_22 = arith.constant 0 : index
      %23 = vector.load %arg9[%c0_21, %c0_22] : memref<128x128xbf16, #tpu.memory_space<vmem>>, vector<128x128xbf16>
      tpu.vector_store %arg9[%c0_21, %c0_22], %22 {strides = array<i32>} : memref<128x128xbf16, #tpu.memory_space<vmem>>, vector<128x128xbf16>,
      %cst_23 = arith.constant 0.000000e+00 : f32
      %24 = vector.broadcast %cst_23 : f32 to vector<1x128xf32>
      %c0_24 = arith.constant 0 : index
      %c0_25 = arith.constant 0 : index
      %25 = vector.load %arg10[%c0_24, %c0_25] : memref<1x128xf32, #tpu.memory_space<vmem>>, vector<1x128xf32>
      tpu.vector_store %arg10[%c0_24, %c0_25], %24 {strides = array<i32>} : memref<1x128xf32, #tpu.memory_space<vmem>>, vector<1x128xf32>,
    } else {
    }
    %c0 = arith.constant 0 : index
    %c0_1 = arith.constant 0 : index
    %3 = vector.load %arg1[%c0, %c0_1] : memref<128x128xbf16, #tpu.memory_space<vmem>>, vector<128x128xbf16>
    %c0_2 = arith.constant 0 : index
    %c0_3 = arith.constant 0 : index
    %4 = vector.load %arg9[%c0_2, %c0_3] : memref<128x128xbf16, #tpu.memory_space<vmem>>, vector<128x128xbf16>
    %cst = arith.constant dense<0.000000e+00> : vector<128x128xf32>
    %5 = tpu.matmul %3, %4, %cst {dimension_numbers = #tpu.dot_dimension_numbers<[1], [0], [0], [1], [0, 0, 1, 1], [], []>} : vector<128x128xbf16>, vector<128x128xbf16>, vector<128x128xf32> -> vector<128x128xf32>
    %c0_4 = arith.constant 0 : index
    %c0_5 = arith.constant 0 : index
    %6 = vector.load %arg5[%c0_4, %c0_5] : memref<1x128xf32, #tpu.memory_space<vmem>>, vector<1x128xf32>
    %7 = vector.broadcast %6 : vector<1x128xf32> to vector<128x128xf32>
    %8 = arith.addf %5, %7 : vector<128x128xf32>
    %cst_6 = arith.constant 0.000000e+00 : f32
    %9 = vector.broadcast %cst_6 : f32 to vector<128x128xf32>
    %10 = arith.maximumf %8, %9 : vector<128x128xf32>
    %c0_7 = arith.constant 0 : index
    %c0_8 = arith.constant 0 : index
    %11 = vector.load %arg10[%c0_7, %c0_8] : memref<1x128xf32, #tpu.memory_space<vmem>>, vector<1x128xf32>
    %c0_9 = arith.constant 0 : index
    %c0_10 = arith.constant 0 : index
    %12 = vector.load %arg2[%c0_9, %c0_10] : memref<1x128xf32, #tpu.memory_space<vmem>>, vector<1x128xf32>
    %cst_11 = arith.constant dense<0.000000e+00> : vector<1x128xf32>
    %13 = tpu.matmul %12, %10, %cst_11 {dimension_numbers = #tpu.dot_dimension_numbers<[1], [0], [0], [1], [0, 0, 1, 1], [], []>} : vector<1x128xf32>, vector<128x128xf32>, vector<1x128xf32> -> vector<1x128xf32>
    %14 = arith.addf %11, %13 : vector<1x128xf32>
    %c0_12 = arith.constant 0 : index
    %c0_13 = arith.constant 0 : index
    %15 = vector.load %arg10[%c0_12, %c0_13] : memref<1x128xf32, #tpu.memory_space<vmem>>, vector<1x128xf32>
    tpu.vector_store %arg10[%c0_12, %c0_13], %14 {strides = array<i32>} : memref<1x128xf32, #tpu.memory_space<vmem>>, vector<1x128xf32>,
    %c0_i32_14 = arith.constant 0 : i32
    %16 = arith.cmpi eq, %arg0, %c0_i32_14 : i32
    %17 = arith.extui %16 : i1 to i32
    %c0_i32_15 = arith.constant 0 : i32
    %18 = arith.cmpi ne, %17, %c0_i32_15 : i32
    scf.if %18 {
      %c0_16 = arith.constant 0 : index
      %c0_17 = arith.constant 0 : index
      %19 = vector.load %arg10[%c0_16, %c0_17] : memref<1x128xf32, #tpu.memory_space<vmem>>, vector<1x128xf32>
      %c0_18 = arith.constant 0 : index
      %c0_19 = arith.constant 0 : index
      %20 = vector.load %arg6[%c0_18, %c0_19] : memref<128x128xf32, #tpu.memory_space<vmem>>, vector<128x128xf32>
      %cst_20 = arith.constant dense<0.000000e+00> : vector<1x128xf32>
      %21 = tpu.matmul %19, %20, %cst_20 {dimension_numbers = #tpu.dot_dimension_numbers<[1], [0], [0], [1], [0, 0, 1, 1], [], []>} : vector<1x128xf32>, vector<128x128xf32>, vector<1x128xf32> -> vector<1x128xf32>
      %c0_21 = arith.constant 0 : index
      %c0_22 = arith.constant 0 : index
      %22 = vector.load %arg7[%c0_21, %c0_22] : memref<1x128xf32, #tpu.memory_space<vmem>>, vector<1x128xf32>
      %23 = arith.addf %21, %22 : vector<1x128xf32>
      %c0_23 = arith.constant 0 : index
      %c0_24 = arith.constant 0 : index
      %24 = vector.load %arg8[%c0_23, %c0_24] : memref<1x128xf32, #tpu.memory_space<vmem>>, vector<1x128xf32>
      tpu.vector_store %arg8[%c0_23, %c0_24], %23 {strides = array<i32>} : memref<1x128xf32, #tpu.memory_space<vmem>>, vector<1x128xf32>,
    } else {
    }
    return
  }
  func.func @transform_0(%arg0: i32) -> (i32, i32) {
    %c0_i32 = arith.constant 0 : i32
    %c0_i32_0 = arith.constant 0 : i32
    return %arg0, %c0_i32 : i32, i32
  }
  func.func @transform_1(%arg0: i32) -> (i32, i32) {
    %c0_i32 = arith.constant 0 : i32
    %c0_i32_0 = arith.constant 0 : i32
    return %c0_i32, %arg0 : i32, i32
  }
  func.func @transform_2(%arg0: i32) -> (i32, i32) {
    %c0_i32 = arith.constant 0 : i32
    %c0_i32_0 = arith.constant 0 : i32
    %c0_i32_1 = arith.constant 0 : i32
    return %c0_i32, %c0_i32_0 : i32, i32
  }
  func.func @transform_3(%arg0: i32) -> (i32, i32) {
    %c0_i32 = arith.constant 0 : i32
    %c0_i32_0 = arith.constant 0 : i32
    %c0_i32_1 = arith.constant 0 : i32
    return %c0_i32, %c0_i32_0 : i32, i32
  }
  func.func @transform_4(%arg0: i32) -> (i32, i32) {
    %c0_i32 = arith.constant 0 : i32
    %c0_i32_0 = arith.constant 0 : i32
    %c0_i32_1 = arith.constant 0 : i32
    return %c0_i32, %c0_i32_0 : i32, i32
  }
  func.func @transform_5(%arg0: i32) -> (i32, i32) {
    %c0_i32 = arith.constant 0 : i32
    %c0_i32_0 = arith.constant 0 : i32
    %c0_i32_1 = arith.constant 0 : i32
    return %c0_i32, %c0_i32_0 : i32, i32
  }
  func.func @transform_6(%arg0: i32) -> (i32, i32) {
    %c0_i32 = arith.constant 0 : i32
    %c0_i32_0 = arith.constant 0 : i32
    %c0_i32_1 = arith.constant 0 : i32
    return %c0_i32, %c0_i32_0 : i32, i32
  }
  func.func @transform_7(%arg0: i32) -> (i32, i32) {
    %c0_i32 = arith.constant 0 : i32
    %c0_i32_0 = arith.constant 0 : i32
    %c0_i32_1 = arith.constant 0 : i32
    return %c0_i32, %c0_i32_0 : i32, i32
  }
}

</mosaic_0001>

<bundles_post_ra>
// kernel: tpu_custom_call.1
= control target key start
LH: loop header
LB: loop body
LE: loop exit
PB: predicated region body
PF: predicated region fallthrough
CT: control target
= control target key end

     0   :  { %12 = vsyncpa [#allocation5], 0  ;;  %s939_s0 = inlined_call_operand.hbm [shape: bf16[128,128], index: 0, kind: input, shape index: {}]   ;;  %s940_s1 = inlined_call_operand.hbm [shape: f32[1,128], index: 1, kind: input, shape index: {}]   ;;  %s941_s2 = inlined_call_operand.hbm [shape: f32[128,128], index: 2, kind: input, shape index: {}]   ;;  %s942_s3 = inlined_call_operand.hbm [shape: f32[128,128], index: 3, kind: input, shape index: {}]   ;;  %s943_s4 = inlined_call_operand.vmem [shape: f32[1,128], index: 4, kind: input, shape index: {}]   ;;  %s944_s5 = inlined_call_operand.hbm [shape: f32[128,128], index: 5, kind: input, shape index: {}]   ;;  %s945_s6 = inlined_call_operand.vmem [shape: f32[1,128], index: 6, kind: input, shape index: {}]   ;;  %s946_s7 = inlined_call_operand.hbm [shape: f32[1,128], index: 7, kind: output, shape index: {}]  }
   0x1   :  { %13 = vsyncpa [#allocation8], 0 }
   0x2   :  { %14 = vsyncpa [#allocation11], 0  ;;  %s34_s26 = sshll.u32 %s940_s1, 4  ;;  %s35_s26 = int_to_ptr.hbm [resolvable:$true] %s34_s26 }
   0x3   :  { %15 = vsyncpa [#allocation6], 0  ;;  %s834_s27 = smov [#allocation7]   ;;  %s57_s8 = sshll.u32 %s942_s3, 4  ;;  %s58_s8 = int_to_ptr.hbm [resolvable:$true] %s57_s8 }
   0x4   :  { %s36_s28 = sshll.u32 %s834_s27, 4  ;;  %s835_s9 = smov [#allocation10]   ;;  %s37_s28 = int_to_ptr.vmem [resolvable:$true] %s36_s28 }
   0x5   :  { %39 = dma.hbm_to_vmem [thread:$0]  %s35_s26, 16, %s37_s28, [#allocation8]  }
   0x6   :  { %s59_s10 = sshll.u32 %s835_s9, 4  ;;  %s20_s13 = sshll.u32 %s939_s0, 4  ;;  %s60_s10 = int_to_ptr.vmem [resolvable:$true] %s59_s10  ;;  %s21_s13 = int_to_ptr.hbm [resolvable:$true] %s20_s13 }
   0x7   :  { %s836_s1 = smov 128   ;;  %s837_s14 = smov 8  }
   0x8   :  { %65 = dma.hbm_to_vmem [thread:$0]  %s58_s8, 2048, %s60_s10, [#allocation11], %s836_s1, %s836_s1, %s837_s14  }
   0x9   :  { %s838_s15 = smov [#allocation4]   ;;  %s44_s19 = sshll.u32 %s941_s2, 4  ;;  %s45_s19 = int_to_ptr.hbm [resolvable:$true] %s44_s19 }
   0xa   :  { %s22_s16 = sshll.u32 %s838_s15, 4  ;;  %s839_s3 = smov 64   ;;  %s23_s16 = int_to_ptr.vmem [resolvable:$true] %s22_s16 }
   0xb   :  { %s840_s20 = smov 4   ;;  %s841_s21 = smov [#allocation9]  }
   0xc   :  { %28 = dma.hbm_to_vmem [thread:$0]  %s21_s13, 1024, %s23_s16, [#allocation5], %s839_s3, %s839_s3, %s840_s20  }
   0xd   :  { %s46_s22 = sshll.u32 %s841_s21, 4  ;;  %s72_s24 = sshll.u32 %s944_s5, 4  ;;  %s47_s22 = int_to_ptr.vmem [resolvable:$true] %s46_s22  ;;  %s73_s24 = int_to_ptr.hbm [resolvable:$true] %s72_s24 }
   0xe   :  { %52 = dma.hbm_to_vmem [thread:$0]  %s45_s19, 2048, %s47_s22, [#allocation8], %s836_s1, %s836_s1, %s837_s14  }
   0xf   :  { %s842_s25 = smov [#allocation12]  }
  0x10   :  { %s74_s26 = sshll.u32 %s842_s25, 4  ;;  %s75_s26 = int_to_ptr.vmem [resolvable:$true] %s74_s26 }
  0x11   :  { %80 = dma.hbm_to_vmem [thread:$0]  %s73_s24, 2048, %s75_s26, [#allocation11], %s836_s1, %s836_s1, %s837_s14  }
  0x12   :  { %826 = dma.done.wait [#allocation5], 1024  }
  0x13   :  { %827 = vsyncadd [#allocation5], 4294966272 }
  0x14   :  { %828 = dma.done.wait [#allocation8], 2064  }
  0x15   :  { %829 = vsyncadd [#allocation8], 4294965232 }
  0x16   :  { %830 = dma.done.wait [#allocation11], 4096  }
  0x17   :  { %831 = vsyncadd [#allocation11], 4294963200  ;;  %v138_v0 = vld [vmem:[#allocation10 + $0x78] sm:$0xff]  ;;  %v137_v1 = vld [vmem:[#allocation10 + $0x70] sm:$0xff]  ;;  %s844_s28 = smov [#allocation13]   ;;  %s507_s9 = sshll.u32 %s946_s7, 4  ;;  %s508_s9 = int_to_ptr.hbm [resolvable:$true] %s507_s9 }
  0x18   :  { %139 = vmatpush.msra.mxu0 %v138_v0  ;;  %646 = vmatpush.msra.mxu2 %v138_v0  ;;  %v136_v2 = vld [vmem:[#allocation10 + $0x68] sm:$0xff]  ;;  %v135_v3 = vld [vmem:[#allocation10 + $0x60] sm:$0xff]  ;;  %v134_v4 = vld [vmem:[#allocation10 + $0x58] sm:$0xff]  ;;  %s505_s29 = sshll.u32 %s844_s28, 4  ;;  %s506_s29 = int_to_ptr.vmem [resolvable:$true] %s505_s29 }
  0x19   :  { %v133_v5 = vld [vmem:[#allocation10 + $0x50] sm:$0xff]  ;;  %v132_v6 = vld [vmem:[#allocation10 + $0x48] sm:$0xff]  ;;  %v131_v7 = vld [vmem:[#allocation10 + $0x40] sm:$0xff] }
  0x1a   :  { %140 = vmatpush.msra.mxu0 %v137_v1  ;;  %647 = vmatpush.msra.mxu2 %v137_v1  ;;  %v130_v8 = vld [vmem:[#allocation10 + $0x38] sm:$0xff]  ;;  %v129_v9 = vld [vmem:[#allocation10 + $0x30] sm:$0xff]  ;;  %v128_v10 = vld [vmem:[#allocation10 + $0x28] sm:$0xff] }
  0x1b   :  { %v127_v11 = vld [vmem:[#allocation10 + $0x20] sm:$0xff]  ;;  %v126_v12 = vld [vmem:[#allocation10 + $0x18] sm:$0xff]  ;;  %v125_v13 = vld [vmem:[#allocation10 + $0x10] sm:$0xff] }
  0x1c   :  { %141 = vmatpush.msra.mxu0 %v136_v2  ;;  %648 = vmatpush.msra.mxu2 %v136_v2  ;;  %v124_v14 = vld [vmem:[#allocation10 + $0x8] sm:$0xff]  ;;  %v123_v15 = vld [vmem:[#allocation10] sm:$0xff]  ;;  %v117_v19 = vld [vmem:[#allocation9 + $0x50] sm:$0xff] }
  0x1d   :  { %v107_v16 = vld [vmem:[#allocation9] sm:$0xff]  ;;  %v116_v17 = vld [vmem:[#allocation9 + $0x48] sm:$0xff]  ;;  %v109_v20 = vld [vmem:[#allocation9 + $0x10] sm:$0xff] }
  0x1e   :  { %142 = vmatpush.msra.mxu0 %v135_v3  ;;  %649 = vmatpush.msra.mxu2 %v135_v3  ;;  %v108_v18 = vld [vmem:[#allocation9 + $0x8] sm:$0xff]  ;;  %v118_v21 = vld [vmem:[#allocation9 + $0x58] sm:$0xff]  ;;  %v119_v23 = vld [vmem:[#allocation9 + $0x60] sm:$0xff] }
  0x1f   :  { %v110_v22 = vld [vmem:[#allocation9 + $0x18] sm:$0xff]  ;;  %v111_v24 = vld [vmem:[#allocation9 + $0x20] sm:$0xff]  ;;  %v120_v25 = vld [vmem:[#allocation9 + $0x68] sm:$0xff] }
  0x20   :  { %143 = vmatpush.msra.mxu0 %v134_v4  ;;  %650 = vmatpush.msra.mxu2 %v134_v4  ;;  %v112_v26 = vld [vmem:[#allocation9 + $0x28] sm:$0xff]  ;;  %v121_v27 = vld [vmem:[#allocation9 + $0x70] sm:$0xff]  ;;  %v122_v29 = vld [vmem:[#allocation9 + $0x78] sm:$0xff] }
  0x21   :  { %v113_v28 = vld [vmem:[#allocation9 + $0x30] sm:$0xff]  ;;  %v114_v30 = vld [vmem:[#allocation9 + $0x38] sm:$0xff]  ;;  %v115_v31 = vld [vmem:[#allocation9 + $0x40] sm:$0xff] }
  0x22   :  { %144 = vmatpush.msra.mxu0 %v133_v5  ;;  %651 = vmatpush.msra.mxu2 %v133_v5  ;;  %v583_v0 = vld [vmem:[#allocation4] sm:$0xff]  ;;  %v588_v1 = vld [vmem:[#allocation4 + $0x28] sm:$0xff]  ;;  %v589_v3 = vld [vmem:[#allocation4 + $0x30] sm:$0xff] }
  0x23   :  { %v584_v2 = vld [vmem:[#allocation4 + $0x8] sm:$0xff]  ;;  %v585_v4 = vld [vmem:[#allocation4 + $0x10] sm:$0xff]  ;;  %v590_v5 = vld [vmem:[#allocation4 + $0x38] sm:$0xff] }
  0x24   :  { %145 = vmatpush.msra.mxu0 %v132_v6  ;;  %652 = vmatpush.msra.mxu2 %v132_v6  ;;  %v586_v6 = vld [vmem:[#allocation4 + $0x18] sm:$0xff] }
  0x26   :  { %146 = vmatpush.msra.mxu0 %v131_v7  ;;  %653 = vmatpush.msra.mxu2 %v131_v7  ;;  %v587_v7 = vld [vmem:[#allocation4 + $0x20] sm:$0xff] }
  0x28   :  { %147 = vmatpush.msra.mxu0 %v130_v8  ;;  %654 = vmatpush.msra.mxu2 %v130_v8 }
  0x2a   :  { %148 = vmatpush.msra.mxu0 %v129_v9  ;;  %655 = vmatpush.msra.mxu2 %v129_v9 }
  0x2c   :  { %149 = vmatpush.msra.mxu0 %v128_v10  ;;  %656 = vmatpush.msra.mxu2 %v128_v10 }
  0x2e   :  { %150 = vmatpush.msra.mxu0 %v127_v11  ;;  %657 = vmatpush.msra.mxu2 %v127_v11 }
  0x30   :  { %151 = vmatpush.msra.mxu0 %v126_v12  ;;  %658 = vmatpush.msra.mxu2 %v126_v12 }
  0x32   :  { %152 = vmatpush.msra.mxu0 %v125_v13  ;;  %659 = vmatpush.msra.mxu2 %v125_v13 }
  0x34   :  { %153 = vmatpush.msra.mxu0 %v124_v14  ;;  %660 = vmatpush.msra.mxu2 %v124_v14 }
  0x36   :  { %154 = vmatpush.msra.mxu0 %v123_v15  ;;  %661 = vmatpush.msra.mxu2 %v123_v15 }
  0x37   :  { %155 = vmatmul.f32.vlgmr.msra.gmra.mxu0 %v107_v16  ;;  %182 = vmatmul.f32.vlgmr.msra.gmra.mxu2 %v116_v17 }
  0x3f   :  { %158 = vmatmul.f32.gmra.mxu0 %v108_v18  ;;  %185 = vmatmul.f32.gmra.mxu2 %v117_v19  ;;  %v911_v19 = vld [vmem:[%s943_s4] ss:$0 sm:$0xff] }
  0x47   :  { %161 = vmatmul.f32.gmra.mxu0 %v109_v20  ;;  %188 = vmatmul.f32.gmra.mxu2 %v118_v21 }
  0x4f   :  { %164 = vmatmul.f32.gmra.mxu0 %v110_v22  ;;  %191 = vmatmul.f32.gmra.mxu2 %v119_v23 }
  0x57   :  { %167 = vmatmul.f32.gmra.mxu0 %v111_v24  ;;  %194 = vmatmul.f32.gmra.mxu2 %v120_v25 }
  0x5f   :  { %170 = vmatmul.f32.gmra.mxu0 %v112_v26  ;;  %197 = vmatmul.f32.gmra.mxu2 %v121_v27 }
  0x67   :  { %173 = vmatmul.f32.gmra.mxu0 %v113_v28  ;;  %200 = vmatmul.f32.gmra.mxu2 %v122_v29 }
  0x6f   :  { %176 = vmatmul.f32.gmra.mxu0 %v114_v30 }
  0x77   :  { %179 = vmatmul.f32.gmra.mxu0 %v115_v31 }
  0xb4   :  { %v156_v32 = vpop.f32.mrf.mxu0 }
  0xba   :  { %v183_v33 = vpop.f32.mrf.mxu2 }
  0xbc   :  { %v159_v34 = vpop.f32.mrf.mxu0 }
  0xbd   :  { %v602_v35 = vpack.c.bf16 %v159_v34, %v156_v32 }
  0xbf   :  { %603 = vst [vmem:[#allocation2 + $0x30] sm:$0xff] %v602_v35  }
  0xc2   :  { %v186_v36 = vpop.f32.mrf.mxu2 }
  0xc4   :  { %v162_v37 = vpop.f32.mrf.mxu0 }
  0xc6   :  { %v591_v63 = vld [vmem:[#allocation2 + $0x30] sm:$0xff] }
  0xca   :  { %v189_v38 = vpop.f32.mrf.mxu2 }
  0xcb   :  { %v627_v39 = vpack.c.bf16 %v189_v38, %v186_v36  ;;  %v477_v36 = vld [vmem:[#allocation12 + $0x78] sm:$0xff]  ;;  %v843_v38 = vmov 0.0  }
  0xcc   :  { %v165_v40 = vpop.f32.mrf.mxu0  ;;  %236 = vst [vmem:[#allocation3] sm:$0x1] %v843_v38 }
  0xcd   :  { %643 = vst [vmem:[#allocation2 + $0x20] sm:$0xff] %v627_v39   ;;  %v607_v41 = vpack.c.bf16 %v165_v40, %v162_v37  ;;  %v476_v37 = vld [vmem:[#allocation12 + $0x70] sm:$0xff]  ;;  %v475_v39 = vld [vmem:[#allocation12 + $0x68] sm:$0xff]  ;;  %v474_v40 = vld [vmem:[#allocation12 + $0x60] sm:$0xff] }
  0xcf   :  { %639 = vst [vmem:[#allocation2] sm:$0xff] %v607_v41   ;;  %v473_v41 = vld [vmem:[#allocation12 + $0x58] sm:$0xff] }
  0xd2   :  { %v192_v42 = vpop.f32.mrf.mxu2 }
  0xd4   :  { %v168_v43 = vpop.f32.mrf.mxu0  ;;  %v596_v58 = vld [vmem:[#allocation2 + $0x20] sm:$0xff] }
  0xd6   :  { %v592_v62 = vld [vmem:[#allocation2] sm:$0xff] }
  0xda   :  { %v195_v44 = vpop.f32.mrf.mxu2 }
  0xdb   :  { %v632_v45 = vpack.c.bf16 %v195_v44, %v192_v42 }
  0xdc   :  { %v171_v46 = vpop.f32.mrf.mxu0 }
  0xdd   :  { %644 = vst [vmem:[#allocation2 + $0x28] sm:$0xff] %v632_v45   ;;  %v612_v47 = vpack.c.bf16 %v171_v46, %v168_v43  ;;  %v472_v43 = vld [vmem:[#allocation12 + $0x50] sm:$0xff]  ;;  %v471_v46 = vld [vmem:[#allocation12 + $0x48] sm:$0xff] }
  0xdf   :  { %640 = vst [vmem:[#allocation2 + $0x18] sm:$0xff] %v612_v47  }
  0xe2   :  { %v198_v48 = vpop.f32.mrf.mxu2 }
  0xe4   :  { %v174_v49 = vpop.f32.mrf.mxu0  ;;  %v597_v57 = vld [vmem:[#allocation2 + $0x28] sm:$0xff] }
  0xe6   :  { %v593_v61 = vld [vmem:[#allocation2 + $0x18] sm:$0xff] }
  0xea   :  { %v201_v50 = vpop.f32.mrf.mxu2 }
  0xeb   :  { %v637_v51 = vpack.c.bf16 %v201_v50, %v198_v48 }
  0xec   :  { %v177_v52 = vpop.f32.mrf.mxu0 }
  0xed   :  { %645 = vst [vmem:[#allocation2 + $0x38] sm:$0xff] %v637_v51   ;;  %v617_v53 = vpack.c.bf16 %v177_v52, %v174_v49  ;;  %v470_v49 = vld [vmem:[#allocation12 + $0x40] sm:$0xff]  ;;  %v469_v52 = vld [vmem:[#allocation12 + $0x38] sm:$0xff] }
  0xef   :  { %641 = vst [vmem:[#allocation2 + $0x10] sm:$0xff] %v617_v53  }
  0xf4   :  { %v180_v54 = vpop.f32.mrf.mxu0  ;;  %v598_v55 = vld [vmem:[#allocation2 + $0x38] sm:$0xff] }
  0xf5   :  { %v622_v56 = vpack.c.bf16 %v183_v33, %v180_v54  ;;  %369 = vmatpush.bf16.msra.mxu1 %v598_v55  ;;  %662 = vmatpush.bf16.msra.mxu3 %v598_v55  ;;  %v468_v55 = vld [vmem:[#allocation12 + $0x30] sm:$0xff] }
  0xf6   :  { %v594_v60 = vld [vmem:[#allocation2 + $0x10] sm:$0xff] }
  0xf7   :  { %642 = vst [vmem:[#allocation2 + $0x8] sm:$0xff] %v622_v56  }
  0xf9   :  { %370 = vmatpush.bf16.msra.mxu1 %v597_v57  ;;  %663 = vmatpush.bf16.msra.mxu3 %v597_v57 }
  0xfd   :  { %371 = vmatpush.bf16.msra.mxu1 %v596_v58  ;;  %664 = vmatpush.bf16.msra.mxu3 %v596_v58  ;;  %v467_v58 = vld [vmem:[#allocation12 + $0x28] sm:$0xff] }
  0xfe   :  { %v595_v59 = vld [vmem:[#allocation2 + $0x8] sm:$0xff] }
 0x101   :  { %372 = vmatpush.bf16.msra.mxu1 %v595_v59  ;;  %665 = vmatpush.bf16.msra.mxu3 %v595_v59 }
 0x105   :  { %373 = vmatpush.bf16.msra.mxu1 %v594_v60  ;;  %666 = vmatpush.bf16.msra.mxu3 %v594_v60 }
 0x109   :  { %374 = vmatpush.bf16.msra.mxu1 %v593_v61  ;;  %667 = vmatpush.bf16.msra.mxu3 %v593_v61  ;;  %v466_v61 = vld [vmem:[#allocation12 + $0x20] sm:$0xff] }
 0x10d   :  { %375 = vmatpush.bf16.msra.mxu1 %v592_v62  ;;  %668 = vmatpush.bf16.msra.mxu3 %v592_v62 }
 0x111   :  { %376 = vmatpush.bf16.msra.mxu1 %v591_v63  ;;  %669 = vmatpush.bf16.msra.mxu3 %v591_v63 }
 0x114   :  { %377 = vmatmul.bf16.vlgmr.msra.gmra.mxu1 %v583_v0  ;;  %402 = vmatmul.bf16.vlgmr.msra.gmra.mxu3 %v588_v1  ;;  %v465_v0 = vld [vmem:[#allocation12 + $0x18] sm:$0xff] }
 0x115   :  { %479 = vmatpush.msrb.mxu3 %v477_v36 }
 0x117   :  { %480 = vmatpush.msrb.mxu3 %v476_v37 }
 0x119   :  { %481 = vmatpush.msrb.mxu3 %v475_v39 }
 0x11b   :  { %482 = vmatpush.msrb.mxu3 %v474_v40 }
 0x11d   :  { %483 = vmatpush.msrb.mxu3 %v473_v41 }
 0x11f   :  { %484 = vmatpush.msrb.mxu3 %v472_v43 }
 0x121   :  { %485 = vmatpush.msrb.mxu3 %v471_v46 }
 0x123   :  { %486 = vmatpush.msrb.mxu3 %v470_v49 }
 0x124   :  { %382 = vmatmul.bf16.gmra.mxu1 %v584_v2  ;;  %407 = vmatmul.bf16.gmra.mxu3 %v589_v3 }
 0x125   :  { %487 = vmatpush.msrb.mxu3 %v469_v52 }
 0x127   :  { %488 = vmatpush.msrb.mxu3 %v468_v55 }
 0x129   :  { %489 = vmatpush.msrb.mxu3 %v467_v58 }
 0x12b   :  { %490 = vmatpush.msrb.mxu3 %v466_v61 }
 0x12d   :  { %491 = vmatpush.msrb.mxu3 %v465_v0 }
 0x134   :  { %387 = vmatmul.bf16.gmra.mxu1 %v585_v4  ;;  %412 = vmatmul.bf16.gmra.mxu3 %v590_v5 }
 0x144   :  { %392 = vmatmul.bf16.gmra.mxu1 %v586_v6 }
 0x154   :  { %397 = vmatmul.bf16.gmra.mxu1 %v587_v7  ;;  %v435_v7 = vld [vmem:[#allocation7] sm:$0x1] }
 0x191   :  { %v900_v8 = vpop.f32.mrf.mxu1 }
 0x192   :  { %v379_v3 = vadd.f32 %v911_v19, %v900_v8 }
 0x194   :  { %v418_v6 = vmax.f32 %v379_v3, 0.0 }
 0x197   :  { %v403_v9 = vpop.f32.mrf.mxu3 }
 0x198   :  { %v404_v30 = vadd.f32 %v911_v19, %v403_v9  ;;  %v464_v9 = vld [vmem:[#allocation12 + $0x10] sm:$0xff] }
 0x199   :  { %v902_v10 = vpop.f32.mrf.mxu1  ;;  %492 = vmatpush.msrb.mxu3 %v464_v9 }
 0x19a   :  { %v428_v34 = vmax.f32 %v404_v30, 0.0  ;;  %v381_v1 = vadd.f32 %v911_v19, %v902_v10  ;;  %v462_v10 = vld [vmem:[#allocation12] sm:$0xff] }
 0x19c   :  { %v419_v5 = vmax.f32 %v381_v1, 0.0 }
 0x19f   :  { %v405_v11 = vpop.f32.mrf.mxu3 }
 0x1a0   :  { %v406_v28 = vadd.f32 %v911_v19, %v405_v11  ;;  %v463_v11 = vld [vmem:[#allocation12 + $0x8] sm:$0xff] }
 0x1a1   :  { %v904_v12 = vpop.f32.mrf.mxu1  ;;  %493 = vmatpush.msrb.mxu3 %v463_v11 }
 0x1a2   :  { %v429_v33 = vmax.f32 %v406_v28, 0.0  ;;  %v384_v62 = vadd.f32 %v911_v19, %v904_v12  ;;  %v434_v12 = vld [vmem:[#allocation3] sm:$0x1] }
 0x1a3   :  { %494 = vmatpush.msrb.mxu3 %v462_v10 }
 0x1a4   :  { %v420_v4 = vmax.f32 %v384_v62, 0.0 }
 0x1a7   :  { %v408_v13 = vpop.f32.mrf.mxu3 }
 0x1a8   :  { %v409_v27 = vadd.f32 %v911_v19, %v408_v13 }
 0x1a9   :  { %v906_v14 = vpop.f32.mrf.mxu1 }
 0x1aa   :  { %v430_v31 = vmax.f32 %v409_v27, 0.0  ;;  %v386_v59 = vadd.f32 %v911_v19, %v906_v14 }
 0x1ac   :  { %v421_v2 = vmax.f32 %v386_v59, 0.0 }
 0x1af   :  { %v410_v15 = vpop.f32.mrf.mxu3 }
 0x1b0   :  { %v411_v24 = vadd.f32 %v911_v19, %v410_v15  ;;  %v478_v15 = vld [vmem:[%s945_s6] sm:$0x1] }
 0x1b1   :  { %v388_v16 = vpop.f32.mrf.mxu1 }
 0x1b2   :  { %v431_v29 = vmax.f32 %v411_v24, 0.0  ;;  %v389_v56 = vadd.f32 %v911_v19, %v388_v16 }
 0x1b4   :  { %v422_v63 = vmax.f32 %v389_v56, 0.0 }
 0x1b7   :  { %v413_v17 = vpop.f32.mrf.mxu3 }
 0x1b8   :  { %v414_v20 = vadd.f32 %v911_v19, %v413_v17 }
 0x1b9   :  { %v390_v18 = vpop.f32.mrf.mxu1 }
 0x1ba   :  { %v432_v25 = vmax.f32 %v414_v20, 0.0  ;;  %v391_v53 = vadd.f32 %v911_v19, %v390_v18 }
 0x1bc   :  { %v423_v60 = vmax.f32 %v391_v53, 0.0 }
 0x1bf   :  { %v415_v21 = vpop.f32.mrf.mxu3 }
 0x1c0   :  { %v416_v22 = vadd.f32 %v911_v19, %v415_v21 }
 0x1c1   :  { %v393_v23 = vpop.f32.mrf.mxu1 }
 0x1c2   :  { %v433_v26 = vmax.f32 %v416_v22, 0.0  ;;  %v394_v50 = vadd.f32 %v911_v19, %v393_v23 }
 0x1c4   :  { %436 = vmatpush.msrb.mxu2 %v433_v26  ;;  %v424_v57 = vmax.f32 %v394_v50, 0.0 }
 0x1c6   :  { %437 = vmatpush.msrb.mxu2 %v432_v25 }
 0x1c8   :  { %438 = vmatpush.msrb.mxu2 %v431_v29 }
 0x1c9   :  { %v395_v32 = vpop.f32.mrf.mxu1 }
 0x1ca   :  { %439 = vmatpush.msrb.mxu2 %v430_v31  ;;  %v396_v47 = vadd.f32 %v911_v19, %v395_v32 }
 0x1cc   :  { %440 = vmatpush.msrb.mxu2 %v429_v33  ;;  %v425_v54 = vmax.f32 %v396_v47, 0.0 }
 0x1ce   :  { %441 = vmatpush.msrb.mxu2 %v428_v34 }
 0x1d1   :  { %v398_v35 = vpop.f32.mrf.mxu1 }
 0x1d2   :  { %v399_v44 = vadd.f32 %v911_v19, %v398_v35 }
 0x1d4   :  { %v426_v51 = vmax.f32 %v399_v44, 0.0 }
 0x1d9   :  { %v400_v42 = vpop.f32.mrf.mxu1 }
 0x1da   :  { %v401_v45 = vadd.f32 %v911_v19, %v400_v42 }
 0x1dc   :  { %v427_v48 = vmax.f32 %v401_v45, 0.0 }
 0x1de   :  { %442 = vmatpush.msrb.mxu2 %v427_v48 }
 0x1e0   :  { %443 = vmatpush.msrb.mxu2 %v426_v51 }
 0x1e2   :  { %444 = vmatpush.msrb.mxu2 %v425_v54 }
 0x1e4   :  { %445 = vmatpush.msrb.mxu2 %v424_v57 }
 0x1e6   :  { %446 = vmatpush.msrb.mxu2 %v423_v60 }
 0x1e8   :  { %447 = vmatpush.msrb.mxu2 %v422_v63 }
 0x1ea   :  { %448 = vmatpush.msrb.mxu2 %v421_v2 }
 0x1ec   :  { %449 = vmatpush.msrb.mxu2 %v420_v4 }
 0x1ee   :  { %450 = vmatpush.msrb.mxu2 %v419_v5 }
 0x1f0   :  { %451 = vmatpush.msrb.mxu2 %v418_v6 }
 0x1f1   :  { %452 = vmatmul.f32.vlgmr.msrb.gmra.mxu2 %v435_v7 }
 0x274   :  { %v453_v13 = vpop.f32.mrf.mxu2 }
 0x275   :  { %v456_v14 = vadd.f32 %v453_v13, %v434_v12 }
 0x277   :  { %457 = vst [vmem:[#allocation3] sm:$0x1] %v456_v14 }
 0x27e   :  { %v461_v8 = vld [vmem:[#allocation3] sm:$0x1] }
 0x27f   :  { %495 = vmatmul.f32.vlgmr.msrb.gmra.mxu3 %v461_v8 }
 0x302   :  { %v496_v16 = vpop.f32.mrf.mxu3 }
 0x303   :  { %v497_v17 = vadd.f32 %v496_v16, %v478_v15 }
 0x305   :  { %499 = vst [vmem:[#allocation13] sm:$0x1] %v497_v17 }
 0x306   :  { %510 = dma.vmem_to_hbm [thread:$0]  %s506_s29, 16, %s508_s9, [#allocation6]  }
 0x307   :  { %832 = dma.done.wait [#allocation6], 16  }
 0x308   :  { %833 = vsyncadd [#allocation6], 4294967280 }
 0x309   :  { %515 = vsyncpa [#allocation5], 1 }
 0x30a   :  { %516 = vsyncpa [#allocation8], 1 }
 0x30b   :  { %517 = vsyncpa [#allocation11], 1 }
 0x30c   :  { %518 = vsyncpa [#allocation6], 1 }

</bundles_post_ra>
